<compile_context>
chip_gen: v7x
topology: tpu7x:2x2x1
jax: 0.10.0
libtpu: 0.0.40
codegen_flags: <defaults>
</compile_context>

<pallas_src>
import jax
import jax.numpy as jnp
from jax.experimental import pallas as pl
from jax.experimental.pallas import tpu as pltpu


def gat_kernel(x_ref, w_ref, g_ref, b_ref, o_ref):
    x = x_ref[...]        # (Bt, N, C)
    w = w_ref[...]        # (C, D)
    g = g_ref[...]        # (N, N)
    b = b_ref[...]        # (1, D)

    # h = Linear(x) (no bias): single dot_general, M = Bt*N on the MXU.
    h = jnp.einsum("bnc,cd->bnd", x, w,
                   preferred_element_type=jnp.float32)           # (Bt, N, D)

    # scores = (h h^T) * graph — contract the feature dim of both operands
    # directly (batched over Bt), no explicit transpose of h.
    s = jnp.einsum("bnd,bmd->bnm", h, h,
                   preferred_element_type=jnp.float32)           # (Bt, N, N)
    s = s * g[None]
    # Faithful to the PyTorch module's masked_fill(outputs == 0, -1e16)
    # (this also masks real edges whose logit is exactly 0 — kept for parity
    # with the reference semantics).
    s = jnp.where(s == 0.0, jnp.float32(-1e16), s)

    # Softmax over the last axis with deferred normalization.
    m = jnp.max(s, axis=-1, keepdims=True)                       # (Bt, N, 1)
    p = jnp.exp(s - m)                                           # (Bt, N, N)
    denom = jnp.sum(p, axis=-1, keepdims=True)                   # (Bt, N, 1)
    inv = 1.0 / denom                                            # Bt*N divides only

    out = jnp.einsum("bnm,bmd->bnd", p, h,
                     preferred_element_type=jnp.float32)         # (Bt, N, D)
    # Normalize the (N, D) result instead of the (N, N) attention matrix.
    o_ref[...] = out * inv + b                                   # b: (1,D) broadcasts


def graph_attention_layer(x, w, graph, b, *, batch_tile=None):
    """x: [B, N, C] f32, w: [C, D] f32, graph: [N, N] f32, b: [D] f32 -> [B, N, D] f32."""
    B, N, C = x.shape
    D = w.shape[1]
    bt = B if batch_tile is None else batch_tile
    assert B % bt == 0, "batch_tile must divide B"
    b2 = b.reshape(1, D)

    return pl.pallas_call(
        gat_kernel,
        out_shape=jax.ShapeDtypeStruct((B, N, D), jnp.float32),
        grid_spec=pltpu.PrefetchScalarGridSpec(
            num_scalar_prefetch=0,
            grid=(B // bt,),
            in_specs=[
                pl.BlockSpec((bt, N, C), lambda i: (i, 0, 0)),   # x: one batch tile
                pl.BlockSpec((C, D), lambda i: (0, 0)),          # W (grid-invariant)
                pl.BlockSpec((N, N), lambda i: (0, 0)),          # graph (grid-invariant)
                pl.BlockSpec((1, D), lambda i: (0, 0)),          # bias (grid-invariant)
            ],
            out_specs=pl.BlockSpec((bt, N, D), lambda i: (i, 0, 0)),
        ),
        compiler_params=pltpu.CompilerParams(
            dimension_semantics=("parallel",)),
    )(x, w, graph, b2)


def reference(x, w, graph, b):
    h = jnp.einsum("bnc,cd->bnd", x, w)
    s = jnp.einsum("bnd,bmd->bnm", h, h) * graph[None]
    s = jnp.where(s == 0.0, -1e16, s)
    attn = jax.nn.softmax(s, axis=2)
    return jnp.einsum("bnm,bmd->bnd", attn, h) + b


if __name__ == "__main__":
    B, N, C, D = 2, 16, 8, 16

    key = jax.random.PRNGKey(0)
    k_x, k_w, k_b, k_g = jax.random.split(key, 4)

    x = jax.random.normal(k_x, (B, N, C), dtype=jnp.float32)
    # nn.init.normal_ on W ([D, C] in PyTorch) and b; store W transposed as [C, D].
    w = jax.random.normal(k_w, (C, D), dtype=jnp.float32)
    b = jax.random.normal(k_b, (D,), dtype=jnp.float32)
    # simple 0/1 adjacency with self loops
    graph = (jax.random.uniform(k_g, (N, N)) > 0.5).astype(jnp.float32)
    graph = jnp.maximum(graph, jnp.eye(N, dtype=jnp.float32))

    out = graph_attention_layer(x, w, graph, b)
    out = jax.block_until_ready(out)

    ref = reference(x, w, graph, b)
    assert out.shape == (B, N, D)
    assert jnp.allclose(out, ref, atol=2e-4, rtol=2e-4), "mismatch vs pure-JAX reference"

    print("KERNEL_OK")
</pallas_src>

<mosaic_0001>
module attributes {stable_mosaic.version = 11 : i64} {
  func.func @gat_kernel(%arg0: i32, %arg1: memref<2x16x8xf32, #tpu.memory_space<vmem>>, %arg2: memref<8x16xf32, #tpu.memory_space<vmem>>, %arg3: memref<16x16xf32, #tpu.memory_space<vmem>>, %arg4: memref<1x16xf32, #tpu.memory_space<vmem>>, %arg5: memref<2x16x16xf32, #tpu.memory_space<vmem>>) attributes {dimension_semantics = [#tpu.dimension_semantics<parallel>], iteration_bounds = array<i64: 1>, scalar_prefetch = 0 : i64, scratch_operands = 0 : i64, tpu.core_type = #tpu.core_type<tc>, window_params = [{transform_indices = @transform_0, window_bounds = array<i64: 2, 16, 8>}, {pipeline_mode = #tpu.pipeline_mode<synchronous>, transform_indices = @transform_1, window_bounds = array<i64: 8, 16>}, {pipeline_mode = #tpu.pipeline_mode<synchronous>, transform_indices = @transform_2, window_bounds = array<i64: 16, 16>}, {pipeline_mode = #tpu.pipeline_mode<synchronous>, transform_indices = @transform_3, window_bounds = array<i64: 1, 16>}, {transform_indices = @transform_4, window_bounds = array<i64: 2, 16, 16>}]} {
    %c0 = arith.constant 0 : index
    %c0_0 = arith.constant 0 : index
    %c0_1 = arith.constant 0 : index
    %0 = vector.load %arg1[%c0, %c0_0, %c0_1] : memref<2x16x8xf32, #tpu.memory_space<vmem>>, vector<2x16x8xf32>
    %c0_2 = arith.constant 0 : index
    %c0_3 = arith.constant 0 : index
    %1 = vector.load %arg2[%c0_2, %c0_3] : memref<8x16xf32, #tpu.memory_space<vmem>>, vector<8x16xf32>
    %c0_4 = arith.constant 0 : index
    %c0_5 = arith.constant 0 : index
    %2 = vector.load %arg3[%c0_4, %c0_5] : memref<16x16xf32, #tpu.memory_space<vmem>>, vector<16x16xf32>
    %c0_6 = arith.constant 0 : index
    %c0_7 = arith.constant 0 : index
    %3 = vector.load %arg4[%c0_6, %c0_7] : memref<1x16xf32, #tpu.memory_space<vmem>>, vector<1x16xf32>
    "tpu.trace_start"() <{level = 10 : i32, message = "bnc,cd->bnd"}> : () -> ()
    %cst = arith.constant dense<0.000000e+00> : vector<2x16x16xf32>
    %4 = tpu.matmul %0, %1, %cst {dimension_numbers = #tpu.dot_dimension_numbers<[2], [0], [0, 1], [1], [0, 0, 0, 1, 1, 1], [], []>} : vector<2x16x8xf32>, vector<8x16xf32>, vector<2x16x16xf32> -> vector<2x16x16xf32>
    "tpu.trace_stop"() : () -> ()
    "tpu.trace_start"() <{level = 10 : i32, message = "bnd,bmd->bnm"}> : () -> ()
    %cst_8 = arith.constant dense<0.000000e+00> : vector<2x16x16xf32>
    %5 = tpu.matmul %4, %4, %cst_8 {dimension_numbers = #tpu.dot_dimension_numbers<[2], [2], [1], [1], [0, 0, 0, 1, 1, 1], [0], [0]>} : vector<2x16x16xf32>, vector<2x16x16xf32>, vector<2x16x16xf32> -> vector<2x16x16xf32>
    "tpu.trace_stop"() : () -> ()
    %6 = vector.shape_cast %2 : vector<16x16xf32> to vector<1x16x16xf32>
    %7 = vector.broadcast %6 : vector<1x16x16xf32> to vector<2x16x16xf32>
    %8 = arith.mulf %5, %7 : vector<2x16x16xf32>
    %cst_9 = arith.constant 0.000000e+00 : f32
    %9 = vector.broadcast %cst_9 : f32 to vector<2x16x16xf32>
    %10 = arith.cmpf oeq, %8, %9 : vector<2x16x16xf32>
    %cst_10 = arith.constant -1.000000e+16 : f32
    %11 = vector.broadcast %cst_10 : f32 to vector<2x16x16xf32>
    %12 = arith.select %10, %11, %8 : vector<2x16x16xi1>, vector<2x16x16xf32>
    %cst_11 = arith.constant dense<0xFF800000> : vector<2x16xf32>
    %13 = vector.multi_reduction <maximumf>, %12, %cst_11 [2] : vector<2x16x16xf32> to vector<2x16xf32>
    %14 = vector.shape_cast %13 : vector<2x16xf32> to vector<2x16x1xf32>
    %15 = vector.broadcast %14 : vector<2x16x1xf32> to vector<2x16x16xf32>
    %16 = arith.subf %12, %15 : vector<2x16x16xf32>
    %17 = math.exp %16 : vector<2x16x16xf32>
    %cst_12 = arith.constant dense<0.000000e+00> : vector<2x16xf32>
    %18 = vector.multi_reduction <add>, %17, %cst_12 [2] : vector<2x16x16xf32> to vector<2x16xf32>
    %19 = vector.shape_cast %18 : vector<2x16xf32> to vector<2x16x1xf32>
    %cst_13 = arith.constant 1.000000e+00 : f32
    %20 = vector.broadcast %cst_13 : f32 to vector<2x16x1xf32>
    %21 = arith.divf %20, %19 : vector<2x16x1xf32>
    "tpu.trace_start"() <{level = 10 : i32, message = "bnm,bmd->bnd"}> : () -> ()
    %cst_14 = arith.constant dense<0.000000e+00> : vector<2x16x16xf32>
    %22 = tpu.matmul %17, %4, %cst_14 {dimension_numbers = #tpu.dot_dimension_numbers<[2], [1], [1], [2], [0, 0, 0, 1, 1, 2], [0], [0]>} : vector<2x16x16xf32>, vector<2x16x16xf32>, vector<2x16x16xf32> -> vector<2x16x16xf32>
    "tpu.trace_stop"() : () -> ()
    %23 = vector.broadcast %21 : vector<2x16x1xf32> to vector<2x16x16xf32>
    %24 = arith.mulf %22, %23 : vector<2x16x16xf32>
    %25 = vector.shape_cast %3 : vector<1x16xf32> to vector<1x1x16xf32>
    %26 = vector.broadcast %25 : vector<1x1x16xf32> to vector<2x16x16xf32>
    %27 = arith.addf %24, %26 : vector<2x16x16xf32>
    %c0_15 = arith.constant 0 : index
    %c0_16 = arith.constant 0 : index
    %c0_17 = arith.constant 0 : index
    %28 = vector.load %arg5[%c0_15, %c0_16, %c0_17] : memref<2x16x16xf32, #tpu.memory_space<vmem>>, vector<2x16x16xf32>
    tpu.vector_store %arg5[%c0_15, %c0_16, %c0_17], %27 {strides = array<i32>} : memref<2x16x16xf32, #tpu.memory_space<vmem>>, vector<2x16x16xf32>,
    return
  }
  func.func @transform_0(%arg0: i32) -> (i32, i32, i32) {
    %c0_i32 = arith.constant 0 : i32
    %c0_i32_0 = arith.constant 0 : i32
    %c0_i32_1 = arith.constant 0 : i32
    return %arg0, %c0_i32, %c0_i32_0 : i32, i32, i32
  }
  func.func @transform_1(%arg0: i32) -> (i32, i32) {
    %c0_i32 = arith.constant 0 : i32
    %c0_i32_0 = arith.constant 0 : i32
    %c0_i32_1 = arith.constant 0 : i32
    return %c0_i32, %c0_i32_0 : i32, i32
  }
  func.func @transform_2(%arg0: i32) -> (i32, i32) {
    %c0_i32 = arith.constant 0 : i32
    %c0_i32_0 = arith.constant 0 : i32
    %c0_i32_1 = arith.constant 0 : i32
    return %c0_i32, %c0_i32_0 : i32, i32
  }
  func.func @transform_3(%arg0: i32) -> (i32, i32) {
    %c0_i32 = arith.constant 0 : i32
    %c0_i32_0 = arith.constant 0 : i32
    %c0_i32_1 = arith.constant 0 : i32
    return %c0_i32, %c0_i32_0 : i32, i32
  }
  func.func @transform_4(%arg0: i32) -> (i32, i32, i32) {
    %c0_i32 = arith.constant 0 : i32
    %c0_i32_0 = arith.constant 0 : i32
    %c0_i32_1 = arith.constant 0 : i32
    return %arg0, %c0_i32, %c0_i32_0 : i32, i32, i32
  }
}

</mosaic_0001>

<bundles_post_ra>
// kernel: tpu_custom_call.1
= control target key start
LH: loop header
LB: loop body
LE: loop exit
PB: predicated region body
PF: predicated region fallthrough
CT: control target
= control target key end

     0   :  { %vm26_vm0 = vcmask 64512   ;;  %s762_s0 = inlined_call_operand.vmem [shape: f32[2,16,8], index: 0, kind: input, shape index: {}]   ;;  %s763_s1 = inlined_call_operand.vmem [shape: f32[8,16], index: 1, kind: input, shape index: {}]   ;;  %s764_s2 = inlined_call_operand.vmem [shape: f32[16,16], index: 2, kind: input, shape index: {}]   ;;  %s765_s3 = inlined_call_operand.vmem [shape: f32[1,16], index: 3, kind: input, shape index: {}]   ;;  %s766_s4 = inlined_call_operand.hbm [shape: f32[2,16,16], index: 4, kind: output, shape index: {}]  }
   0x1   :  { %v22_v0 = vld [vmem:[%s763_s1] sm:$0xff]  ;;  %v19_v2 = vld [vmem:[%s762_s0 + $0x8] sm:$0xff]  ;;  %v20_v3 = vld [vmem:[%s762_s0 + $0x10] sm:$0xff] }
   0x2   :  { %v18_v1 = vld [vmem:[%s762_s0] sm:$0xff]  ;;  %577 = vmatprep.subr.mxu0 %v22_v0 }
   0x3   :  { %579 = vmatprep.mubr.msk.f32.mxu0 %vm26_vm0, %v18_v1 }
   0x4   :  { %9 = vsyncpa [#allocation3], 0  ;;  %578 = vmatpush3.msra.mxu0 %v22_v0  ;;  %v21_v4 = vld [vmem:[%s762_s0 + $0x18] sm:$0xff]  ;;  %vm124_vm1 = vcmask 130048   ;;  %v24_v11 = vld [vmem:[%s764_s2 + $0x8] sm:$0xff]  ;;  %s676_s28 = smov [#allocation2]  }
   0x5   :  { %580 = vmatmul.mubr.msk.f32.vlgmr.msra.gmra.mrb[0].mxu0 %vm26_vm0, %v19_v2  ;;  %vm614_vm2 = vmpackc.low %vm124_vm1, %vm124_vm1  ;;  %v23_v12 = vld [vmem:[%s764_s2] sm:$0xff]  ;;  %s528_s29 = sshll.u32 %s676_s28, 4  ;;  %s529_s29 = int_to_ptr.vmem [resolvable:$true] %s528_s29 }
   0x6   :  { %582 = vmatprep.mubr.msk.f32.mxu0 %vm26_vm0, %v20_v3  ;;  %v555_v54 = vld [vmem:[%s765_s3] ss:$0 sm:$0xff]  ;;  %s652_s3 = scalar_lea.vmem %s529_s29, 512  ;;  %p657_p1 = scmp.lt.s32.totalorder %s529_s29, %s529_s29 }
   0x7   :  { %p653_p0 = scmp.ne.s32.totalorder %s529_s29, %s652_s3  ;;  %p658_p2 = scmp.lt.s32.totalorder %s652_s3, %s652_s3 }
   0x9   :  { %583 = vmatmul.mubr.msk.f32.gmra.mrb[2].mxu0 %vm26_vm0, %v21_v4  ;;  %p659_p3 = por %p658_p2, %p657_p1 }
   0xb   :  { %p660_p4 = pnand %p659_p3, %p653_p0 }
  0xd8   :  { %v581_v5 = vpop.f32.mrb[0].mxu0 }
  0xd9   :  { %v105_v6 = vpop.f32.mrb[1].mxu0 }
  0xda   :  { %v613_v7 = vpack.c.bf16 %v581_v5, %v105_v6  ;;  %589 = vmatprep.mubr.msk.f32.mxu1 %vm124_vm1, %v105_v6 }
  0xdc   :  { %v584_v8 = vpop.f32.mrb[2].mxu0  ;;  %615 = vmatprep.subr.msk.bf16.mxu1 %vm614_vm2, %v613_v7 }
  0xdd   :  { %v115_v9 = vpop.f32.mrb[3].mxu0  ;;  %618 = vmatpush3.bf16.xpose.msk.msra.mxu1 %vm614_vm2, %v613_v7 }
  0xde   :  { %v619_v10 = vpack.c.bf16 %v584_v8, %v115_v9  ;;  %596 = vmatprep.mubr.msk.f32.mxu0 %vm124_vm1, %v115_v9  ;;  %626 = vmatprep.subr.bf16.mxu1 %v613_v7 }
  0xe0   :  { %621 = vmatprep.subr.msk.bf16.mxu0 %vm614_vm2, %v619_v10 }
  0xe1   :  { %624 = vmatpush3.bf16.xpose.msk.msra.mxu0 %vm614_vm2, %v619_v10 }
  0xe2   :  { %630 = vmatprep.subr.bf16.mxu0 %v619_v10 }
  0xe4   :  { %590 = vmatmul.mubr.msk.f32.vlgmr.msra.gmra.mrb[0].mxu1 %vm124_vm1, %v581_v5 }
  0xe5   :  { %628 = vmatpush3.bf16.msra.mxu1 %v613_v7 }
  0xe8   :  { %597 = vmatmul.mubr.msk.f32.vlgmr.msra.gmra.mrb[4].mxu0 %vm124_vm1, %v584_v8 }
  0xe9   :  { %632 = vmatpush3.bf16.msra.mxu0 %v619_v10 }
 0x1b7   :  { %v591_v13 = vpop.f32.mrb[0].mxu1 }
 0x1b8   :  { %v288_v14 = vmul.f32 %v591_v13, %v24_v11  ;;  %v197_v15 = vpop.f32.mrb[1].mxu1 }
 0x1b9   :  { %v287_v16 = vmul.f32 %v197_v15, %v23_v12 }
 0x1ba   :  { %vm292_vm3 = vcmp.eq.f32.partialorder %v288_v14, 0.0 }
 0x1bb   :  { %v598_v17 = vpop.f32.mrb[4].mxu0  ;;  %v296_v18 = vsel %vm292_vm3, -1e+16, %v288_v14  ;;  %vm291_vm4 = vcmp.eq.f32.partialorder %v287_v16, 0.0 }
 0x1bc   :  { %v290_v19 = vmul.f32 %v598_v17, %v24_v11  ;;  %v278_v20 = vpop.f32.mrb[5].mxu0  ;;  %v302_v21 = vsel %vm124_vm1, %v296_v18, -inf  ;;  %v295_v22 = vsel %vm291_vm4, -1e+16, %v287_v16 }
 0x1bd   :  { %v289_v23 = vmul.f32 %v278_v20, %v23_v12  ;;  %303 = vmax.xlane.f32.xlu1 %v302_v21  ;;  %v299_v24 = vsel %vm124_vm1, %v295_v22, -inf }
 0x1be   :  { %300 = vmax.xlane.f32.xlu0 %v299_v24  ;;  %vm294_vm5 = vcmp.eq.f32.partialorder %v290_v19, 0.0 }
 0x1bf   :  { %v298_v25 = vsel %vm294_vm5, -1e+16, %v290_v19  ;;  %vm293_vm6 = vcmp.eq.f32.partialorder %v289_v23, 0.0 }
 0x1c0   :  { %v308_v26 = vsel %vm124_vm1, %v298_v25, -inf  ;;  %v297_v27 = vsel %vm293_vm6, -1e+16, %v289_v23 }
 0x1c1   :  { %309 = vmax.xlane.f32.xlu1 %v308_v26  ;;  %v305_v28 = vsel %vm124_vm1, %v297_v27, -inf }
 0x1c2   :  { %306 = vmax.xlane.f32.xlu0 %v305_v28 }
 0x24a   :  { %v304_v29 = vpop.xlane.xlu1 %303 }
 0x24b   :  { %v312_v30 = vsub.f32 %v296_v18, %v304_v29  ;;  %v301_v31 = vpop.xlane.xlu0 %300 }
 0x24c   :  { %v311_v32 = vsub.f32 %v295_v22, %v301_v31 }
 0x24d   :  { %v317_v33 = vmul.f32 1.442695, %v312_v30 }
 0x24e   :  { %v315_v34 = vmul.f32 1.442695, %v311_v32  ;;  %v310_v35 = vpop.xlane.xlu1 %309 }
 0x24f   :  { %636 = vpow2.f32 %v317_v33  ;;  %v314_v36 = vsub.f32 %v298_v25, %v310_v35  ;;  %v307_v37 = vpop.xlane.xlu0 %306 }
 0x250   :  { %638 = vpow2.f32 %v315_v34  ;;  %v313_v38 = vsub.f32 %v297_v27, %v307_v37 }
 0x251   :  { %v321_v39 = vmul.f32 1.442695, %v314_v36 }
 0x252   :  { %v319_v40 = vmul.f32 1.442695, %v313_v38 }
 0x253   :  { %640 = vpow2.f32 %v321_v39 }
 0x254   :  { %642 = vpow2.f32 %v319_v40 }
 0x259   :  { %v637_v41 = vpop.eup %636 }
 0x25a   :  { %v639_v42 = vpop.eup %638  ;;  %v326_v43 = vsel %vm124_vm1, %v637_v41, 0.0 }
 0x25b   :  { %603 = vmatprep.mubr.msk.f32.mxu1 %vm124_vm1, %v639_v42  ;;  %327 = vadd.xlane.f32.xlu1 %v326_v43  ;;  %v323_v44 = vsel %vm124_vm1, %v639_v42, 0.0 }
 0x25c   :  { %604 = vmatmul.mubr.msk.f32.vlgmr.msra.gmra.mrb[2].mxu1 %vm124_vm1, %v637_v41  ;;  %324 = vadd.xlane.f32.xlu0 %v323_v44 }
 0x25d   :  { %v641_v45 = vpop.eup %640 }
 0x25e   :  { %v643_v46 = vpop.eup %642  ;;  %v332_v47 = vsel %vm124_vm1, %v641_v45, 0.0 }
 0x25f   :  { %333 = vadd.xlane.f32.xlu1 %v332_v47  ;;  %610 = vmatprep.mubr.msk.f32.mxu0 %vm124_vm1, %v643_v46  ;;  %v329_v48 = vsel %vm124_vm1, %v643_v46, 0.0 }
 0x260   :  { %611 = vmatmul.mubr.msk.f32.vlgmr.msra.gmra.mrb[6].mxu0 %vm124_vm1, %v641_v45  ;;  %330 = vadd.xlane.f32.xlu0 %v329_v48 }
 0x2e8   :  { %v328_v49 = vpop.xlane.xlu1 %327 }
 0x2e9   :  { %v325_v50 = vpop.xlane.xlu0 %324  ;;  %644 = vrcp.f32 %v328_v49 }
 0x2ea   :  { %646 = vrcp.f32 %v325_v50 }
 0x2ec   :  { %v334_v51 = vpop.xlane.xlu1 %333 }
 0x2ed   :  { %v331_v52 = vpop.xlane.xlu0 %330  ;;  %648 = vrcp.f32 %v334_v51 }
 0x2ee   :  { %650 = vrcp.f32 %v331_v52 }
 0x2f3   :  { %v645_v53 = vpop.eup %644 }
 0x2f4   :  { %v647_v56 = vpop.eup %646 }
 0x2f7   :  { %v649_v61 = vpop.eup %648 }
 0x2f8   :  { %v651_v0 = vpop.eup %650 }
 0x32f   :  { %v605_v55 = vpop.f32.mrb[2].mxu1 }
 0x330   :  { %v506_v57 = vmul.f32 %v645_v53, %v605_v55  ;;  %v415_v58 = vpop.f32.mrb[3].mxu1 }
 0x331   :  { %v505_v59 = vmul.f32 %v647_v56, %v415_v58 }
 0x332   :  { %v516_v60 = vadd.f32 %v555_v54, %v506_v57 }
 0x333   :  { %v515_v62 = vadd.f32 %v555_v54, %v505_v59  ;;  %v612_v63 = vpop.f32.mrb[6].mxu0 }
 0x334   :  { %520 = vst.msk [vmem:[#allocation2 + $0x8] sm:$0xff] %vm124_vm1, %v516_v60  ;;  %v508_v1 = vmul.f32 %v649_v61, %v612_v63  ;;  %v496_v2 = vpop.f32.mrb[7].mxu0 }
 0x335   :  { %519 = vst.msk [vmem:[#allocation2] sm:$0xff] %vm124_vm1, %v515_v62  ;;  %v507_v3 = vmul.f32 %v651_v0, %v496_v2 }
 0x336   :  { %v518_v4 = vadd.f32 %v555_v54, %v508_v1 }
 0x337   :  { %v517_v5 = vadd.f32 %v555_v54, %v507_v3 }
 0x338   :  { %522 = vst.msk [vmem:[#allocation2 + $0x18] sm:$0xff] %vm124_vm1, %v518_v4 }
 0x339   :  { %521 = vst.msk [vmem:[#allocation2 + $0x10] sm:$0xff] %vm124_vm1, %v517_v5 }
 0x33a   :  { %663 = shalt.err (!%p660_p4)
}
 0x33b   :  { %s664_s6 = scalar_lea.hbm %s766_s4, 512 }
 0x33c   :  { %p665_p5 = scmp.ne.s32.totalorder %s766_s4, %s664_s6  ;;  %p668_p6 = scmp.lt.u32.totalorder %s664_s6, %s766_s4 }
 0x33e   :  { %p670_p7 = pnand %p668_p6, %p665_p5 }
 0x340   :  { %673 = shalt.err (!%p670_p7)
}
 0x341   :  { %s677_s11 = smov 128   ;;  %s678_s12 = smov 8  }
 0x342   :  { %534 = dma.vmem_to_hbm [thread:$0]  %s529_s29, 512, %s766_s4, [#allocation3], %s677_s11, %s677_s11, %s678_s12  }
 0x343   :  { %674 = dma.done.wait [#allocation3], 512  }
 0x344   :  { %675 = vsyncadd [#allocation3], 4294966784 }
 0x345   :  { %538 = vsyncpa [#allocation3], 1 }

</bundles_post_ra>
